<compile_context>
chip_gen: v7x
topology: tpu7x:2x2x1
jax: 0.10.0
libtpu: 0.0.40
codegen_flags: <defaults>
</compile_context>

<pallas_src>
import functools

import numpy as np
import jax
import jax.numpy as jnp
from jax.experimental import pallas as pl
from jax.experimental.pallas import tpu as pltpu


def _caption_attention_kernel(cf_ref, dh_ref, mbias_ref,
                              ebt_ref, eb_ref, el_ref, elt_ref,
                              wf_ref, bf_ref, wd_ref, bd_ref, wa_ref,
                              out_ref, u_ref, *, n_chunks, chunk_rows):
    # att2 = cap_decoder_att(decoder_hidden): small f32 matmul, rounded once to
    # bf16 so the (blk_l, block_b) selector dot is a single-pass bf16 MXU op.
    att2 = jnp.dot(dh_ref[...], wd_ref[...],
                   preferred_element_type=jnp.float32) + bd_ref[...]     # (block_b, A)
    att2_b16 = att2.astype(jnp.bfloat16)

    wf = wf_ref[...]                      # (F, A) bf16
    bf = bf_ref[...]                      # (1, A) f32
    wa = wa_ref[...]                      # (1, A) f32

    # Projection + tanh + score over blk_l rows in chunks: EUP tanh / VPU score
    # of chunk i overlaps the MXU projection of chunk i+1 (different VLIW
    # slots) and live f32 intermediates stay at (chunk_rows, A).
    def chunk_body(c, carry):
        r0 = pl.multiple_of(c * chunk_rows, chunk_rows)
        cfc = cf_ref[pl.ds(r0, chunk_rows), :]                           # (chunk, F) bf16
        att1 = jnp.dot(cfc, wf, preferred_element_type=jnp.float32) + bf  # (chunk, A)
        att2x = jnp.dot(ebt_ref[pl.ds(r0, chunk_rows), :], att2_b16,
                        preferred_element_type=jnp.float32)              # (chunk, A)
        t = jnp.tanh(att1 + att2x)
        # cap_full_att score: VPU multiply + lane reduction over A.
        u_ref[pl.ds(r0, chunk_rows), :] = jnp.sum(t * wa, axis=-1, keepdims=True)
        return carry

    jax.lax.fori_loop(0, n_chunks, chunk_body, 0, unroll=True)

    # Fold per-row scores into lane-dense (block_b, L): s[b, l] = u[b*L + l].
    # Tiny f32 selector matmul; keeping it f32 avoids rounding raw scores.
    eb_f = eb_ref[...].astype(jnp.float32)                               # (block_b, blk_l)
    el_f = el_ref[...].astype(jnp.float32)                               # (blk_l, L)
    s = jnp.dot(eb_f, u_ref[...] * el_f, preferred_element_type=jnp.float32)

    # masked_fill as a precomputed additive bias, then stable softmax over L.
    # (cap_full_att's scalar bias is dropped: softmax is shift-invariant.)
    s = s + mbias_ref[...]
    m = jnp.max(s, axis=-1, keepdims=True)
    e = jnp.exp(s - m)
    alpha = e * pl.reciprocal(jnp.sum(e, axis=-1, keepdims=True), approx=False)

    # context = block-diag(alpha) @ cf, entirely on the bf16 MXU path:
    # alpha_big[b, r] = alpha[b, r % L] * [r // L == b], cast to bf16 so the
    # final matmul against the already-bf16 cf is a single MXU pass.
    alpha_b16 = alpha.astype(jnp.bfloat16)
    spread = jnp.dot(alpha_b16, elt_ref[...],
                     preferred_element_type=jnp.float32)                 # (block_b, blk_l)
    alpha_big = (spread * eb_f).astype(jnp.bfloat16)
    out_ref[...] = jnp.dot(alpha_big, cf_ref[...],
                           preferred_element_type=jnp.float32)           # (block_b, F)


def caption_attention(caption_features, decoder_hidden, prev_caption_mask, params,
                      *, block_b=16):
    """caption_features: (B, L, F), decoder_hidden: (B, D), prev_caption_mask: (B, L)."""
    B, L, F = caption_features.shape
    D = decoder_hidden.shape[-1]
    A = params["wf"].shape[1]

    # Batch-block sizing: multiple of 8 (f32 sublanes), blk_l multiple of 16
    # (bf16 sublane pack), and capped at ~A/4 so the block-diagonal context
    # matmul's padded MACs never rival the main projection.
    cap = max(8, (A // 4) // 8 * 8)
    block_b = max(8, min(block_b, cap))
    block_b = -(-block_b // 8) * 8
    if (block_b * L) % 16:
        block_b = -(-block_b // 16) * 16
    n_blocks = -(-B // block_b)
    Bp = n_blocks * block_b
    if Bp != B:
        pad = Bp - B
        caption_features = jnp.pad(caption_features, ((0, pad), (0, 0), (0, 0)))
        decoder_hidden = jnp.pad(decoder_hidden, ((0, pad), (0, 0)))
        prev_caption_mask = jnp.pad(prev_caption_mask, ((0, pad), (0, 0)))
    blk_l = block_b * L

    # 2-4 chunks of the blk_l rows for EUP/MXU overlap (>=64 rows per chunk).
    n_chunks = 1
    for cand in (4, 2):
        if blk_l % cand == 0 and (blk_l // cand) % 16 == 0 and blk_l // cand >= 64:
            n_chunks = cand
            break
    chunk_rows = blk_l // n_chunks

    # Large MXU operands go in bf16; everything else stays f32.
    cf2d = caption_features.reshape(Bp * L, F).astype(jnp.bfloat16)
    wf = params["wf"].astype(jnp.bfloat16)
    dh = decoder_hidden.astype(jnp.float32)
    # Additive mask bias precomputed on host (-1e10 where masked, 0 elsewhere).
    mbias = jnp.where(prev_caption_mask == 0, jnp.float32(-10000000000.0), jnp.float32(0.0))
    wa_row = params["wa"].reshape(1, A).astype(jnp.float32)

    # Static 0/1 structure matrices encoding r = b*L + l (host-built, DMA'd
    # once). 0/1 is exact in bf16, so storage is halved at no precision cost.
    r = np.arange(blk_l)
    ebt = (r[:, None] // L == np.arange(block_b)[None, :]).astype(np.float32)  # (blk_l, block_b)
    eb = np.ascontiguousarray(ebt.T)                                           # (block_b, blk_l)
    el = (r[:, None] % L == np.arange(L)[None, :]).astype(np.float32)          # (blk_l, L)
    elt = np.ascontiguousarray(el.T)                                           # (L, blk_l)

    const = dict(pipeline_mode=pl.Buffered(1))   # fetched once -> single buffer

    kernel = functools.partial(_caption_attention_kernel,
                               n_chunks=n_chunks, chunk_rows=chunk_rows)

    out = pl.pallas_call(
        kernel,
        out_shape=jax.ShapeDtypeStruct((Bp, F), jnp.float32),
        grid=(n_blocks,),
        in_specs=[
            # Streamed per-step inputs (default double-buffered).
            pl.BlockSpec((blk_l, F), lambda i: (i, 0)),               # caption_features (bf16)
            pl.BlockSpec((block_b, D), lambda i: (i, 0)),             # decoder_hidden
            pl.BlockSpec((block_b, L), lambda i: (i, 0)),             # additive mask bias
            # Constant-index operands: single-buffered (pl.Buffered(1)).
            pl.BlockSpec((blk_l, block_b), lambda i: (0, 0), **const),  # Ebt (row -> batch)
            pl.BlockSpec((block_b, blk_l), lambda i: (0, 0), **const),  # Eb
            pl.BlockSpec((blk_l, L), lambda i: (0, 0), **const),        # El  (row -> position)
            pl.BlockSpec((L, blk_l), lambda i: (0, 0), **const),        # ElT
            pl.BlockSpec((F, A), lambda i: (0, 0), **const),            # cap_features_att W (bf16)
            pl.BlockSpec((1, A), lambda i: (0, 0), **const),            # cap_features_att b
            pl.BlockSpec((D, A), lambda i: (0, 0), **const),            # cap_decoder_att W
            pl.BlockSpec((1, A), lambda i: (0, 0), **const),            # cap_decoder_att b
            pl.BlockSpec((1, A), lambda i: (0, 0), **const),            # cap_full_att W (row)
        ],
        out_specs=pl.BlockSpec((block_b, F), lambda i: (i, 0)),        # lane-dense (B, F)
        scratch_shapes=[pltpu.VMEM((blk_l, 1), jnp.float32)],          # per-row scores
        compiler_params=pltpu.CompilerParams(
            dimension_semantics=("parallel",)),
    )(cf2d, dh, mbias,
      jnp.asarray(ebt, dtype=jnp.bfloat16), jnp.asarray(eb, dtype=jnp.bfloat16),
      jnp.asarray(el, dtype=jnp.bfloat16), jnp.asarray(elt, dtype=jnp.bfloat16),
      wf, params["bf"].astype(jnp.float32), params["wd"].astype(jnp.float32),
      params["bd"].astype(jnp.float32), wa_row)
    return out[:B]


def _reference(caption_features, decoder_hidden, prev_caption_mask, params):
    # Mirrors the kernel's bf16 storage/cast decisions (cf, wf, att2, alpha) so
    # the comparison isolates real bugs rather than expected quantization.
    cf = caption_features.astype(jnp.bfloat16).astype(jnp.float32)
    wf = params["wf"].astype(jnp.bfloat16).astype(jnp.float32)
    att1 = cf @ wf + params["bf"]                                      # (B, L, A)
    att2 = decoder_hidden @ params["wd"] + params["bd"]                # (B, A)
    att2 = att2.astype(jnp.bfloat16).astype(jnp.float32)
    att = jnp.squeeze(jnp.tanh(att1 + att2[:, None, :]) @ params["wa"], -1) + params["ba"][0, 0]
    att = jnp.where(prev_caption_mask == 0, -10000000000.0, att)
    alpha = jax.nn.softmax(att, axis=1)
    alpha = alpha.astype(jnp.bfloat16).astype(jnp.float32)
    return jnp.sum(cf * alpha[:, :, None], axis=1)


def init_params(key, caption_features_dim, decoder_dim, attention_dim):
    F = caption_features_dim * 2
    ks = jax.random.split(key, 6)
    # Stored as (in, out), i.e. already transposed relative to torch.nn.Linear.weight.
    return {
        "wf": jax.random.uniform(ks[0], (F, attention_dim), jnp.float32, -0.1, 0.1),
        "bf": jax.random.uniform(ks[1], (1, attention_dim), jnp.float32, -0.1, 0.1),
        "wd": jax.random.uniform(ks[2], (decoder_dim, attention_dim), jnp.float32, -0.1, 0.1),
        "bd": jax.random.uniform(ks[3], (1, attention_dim), jnp.float32, -0.1, 0.1),
        "wa": jax.random.uniform(ks[4], (attention_dim, 1), jnp.float32, -0.1, 0.1),
        "ba": jax.random.uniform(ks[5], (1, 1), jnp.float32, -0.1, 0.1),
    }


if __name__ == "__main__":
    B, L = 32, 8
    caption_features_dim, decoder_dim, attention_dim = 64, 64, 128
    F = caption_features_dim * 2   # 128 -> lane-dense caption features and output

    key = jax.random.PRNGKey(0)
    k_cf, k_dh, k_mask, k_params = jax.random.split(key, 4)

    caption_features = jax.random.normal(k_cf, (B, L, F), jnp.float32)
    decoder_hidden = jax.random.normal(k_dh, (B, decoder_dim), jnp.float32)
    # Binary mask with at least one valid position per row.
    prev_caption_mask = (jax.random.uniform(k_mask, (B, L)) > 0.4).astype(jnp.float32)
    prev_caption_mask = prev_caption_mask.at[:, 0].set(1.0)

    params = init_params(k_params, caption_features_dim, decoder_dim, attention_dim)

    # block_b=16 -> blk_l=128 rows per step, a 2-step "parallel" grid (keeps
    # both v7x TensorCores busy); block_b=32 (grid=1) also fits the A/4 cap
    # and is fine on v5e/v6e.
    context = caption_attention(caption_features, decoder_hidden, prev_caption_mask,
                                params, block_b=16)
    context = jax.block_until_ready(context)

    ref = _reference(caption_features, decoder_hidden, prev_caption_mask, params)
    assert context.shape == (B, F)
    assert jnp.allclose(context, ref, atol=2e-3, rtol=2e-3), "mismatch vs reference"

    print("KERNEL_OK")
</pallas_src>

<mosaic_0001>
module attributes {stable_mosaic.version = 11 : i64} {
  func.func @_caption_attention_kernel(%arg0: i32, %arg1: memref<128x128xbf16, #tpu.memory_space<vmem>>, %arg2: memref<16x64xf32, #tpu.memory_space<vmem>>, %arg3: memref<16x8xf32, #tpu.memory_space<vmem>>, %arg4: memref<128x16xbf16, #tpu.memory_space<vmem>>, %arg5: memref<16x128xbf16, #tpu.memory_space<vmem>>, %arg6: memref<128x8xbf16, #tpu.memory_space<vmem>>, %arg7: memref<8x128xbf16, #tpu.memory_space<vmem>>, %arg8: memref<128x128xbf16, #tpu.memory_space<vmem>>, %arg9: memref<1x128xf32, #tpu.memory_space<vmem>>, %arg10: memref<64x128xf32, #tpu.memory_space<vmem>>, %arg11: memref<1x128xf32, #tpu.memory_space<vmem>>, %arg12: memref<1x128xf32, #tpu.memory_space<vmem>>, %arg13: memref<16x128xf32, #tpu.memory_space<vmem>>, %arg14: memref<128x1xf32, #tpu.memory_space<vmem>>) attributes {dimension_semantics = [#tpu.dimension_semantics<parallel>], iteration_bounds = array<i64: 2>, scalar_prefetch = 0 : i64, scratch_operands = 1 : i64, tpu.core_type = #tpu.core_type<tc>, window_params = [{transform_indices = @transform_0, window_bounds = array<i64: 128, 128>}, {transform_indices = @transform_1, window_bounds = array<i64: 16, 64>}, {transform_indices = @transform_2, window_bounds = array<i64: 16, 8>}, {pipeline_mode = #tpu.pipeline_mode<synchronous>, transform_indices = @transform_3, window_bounds = array<i64: 128, 16>}, {pipeline_mode = #tpu.pipeline_mode<synchronous>, transform_indices = @transform_4, window_bounds = array<i64: 16, 128>}, {pipeline_mode = #tpu.pipeline_mode<synchronous>, transform_indices = @transform_5, window_bounds = array<i64: 128, 8>}, {pipeline_mode = #tpu.pipeline_mode<synchronous>, transform_indices = @transform_6, window_bounds = array<i64: 8, 128>}, {pipeline_mode = #tpu.pipeline_mode<synchronous>, transform_indices = @transform_7, window_bounds = array<i64: 128, 128>}, {pipeline_mode = #tpu.pipeline_mode<synchronous>, transform_indices = @transform_8, window_bounds = array<i64: 1, 128>}, {pipeline_mode = #tpu.pipeline_mode<synchronous>, transform_indices = @transform_9, window_bounds = array<i64: 64, 128>}, {pipeline_mode = #tpu.pipeline_mode<synchronous>, transform_indices = @transform_10, window_bounds = array<i64: 1, 128>}, {pipeline_mode = #tpu.pipeline_mode<synchronous>, transform_indices = @transform_11, window_bounds = array<i64: 1, 128>}, {transform_indices = @transform_12, window_bounds = array<i64: 16, 128>}]} {
    %c0 = arith.constant 0 : index
    %c0_0 = arith.constant 0 : index
    %0 = vector.load %arg2[%c0, %c0_0] : memref<16x64xf32, #tpu.memory_space<vmem>>, vector<16x64xf32>
    %c0_1 = arith.constant 0 : index
    %c0_2 = arith.constant 0 : index
    %1 = vector.load %arg10[%c0_1, %c0_2] : memref<64x128xf32, #tpu.memory_space<vmem>>, vector<64x128xf32>
    %cst = arith.constant dense<0.000000e+00> : vector<16x128xf32>
    %2 = tpu.matmul %0, %1, %cst {dimension_numbers = #tpu.dot_dimension_numbers<[1], [0], [0], [1], [0, 0, 1, 1], [], []>} : vector<16x64xf32>, vector<64x128xf32>, vector<16x128xf32> -> vector<16x128xf32>
    %c0_3 = arith.constant 0 : index
    %c0_4 = arith.constant 0 : index
    %3 = vector.load %arg11[%c0_3, %c0_4] : memref<1x128xf32, #tpu.memory_space<vmem>>, vector<1x128xf32>
    %4 = vector.broadcast %3 : vector<1x128xf32> to vector<16x128xf32>
    %5 = arith.addf %2, %4 : vector<16x128xf32>
    %6 = arith.truncf %5 : vector<16x128xf32> to vector<16x128xbf16>
    %c0_5 = arith.constant 0 : index
    %c0_6 = arith.constant 0 : index
    %7 = vector.load %arg8[%c0_5, %c0_6] : memref<128x128xbf16, #tpu.memory_space<vmem>>, vector<128x128xbf16>
    %c0_7 = arith.constant 0 : index
    %c0_8 = arith.constant 0 : index
    %8 = vector.load %arg9[%c0_7, %c0_8] : memref<1x128xf32, #tpu.memory_space<vmem>>, vector<1x128xf32>
    %c0_9 = arith.constant 0 : index
    %c0_10 = arith.constant 0 : index
    %9 = vector.load %arg12[%c0_9, %c0_10] : memref<1x128xf32, #tpu.memory_space<vmem>>, vector<1x128xf32>
    %c0_i32 = arith.constant 0 : i32
    %c64_i32 = arith.constant 64 : i32
    %10 = arith.muli %c0_i32, %c64_i32 : i32
    %11 = tpu.assume_multiple %10, 64 : i32
    %12 = arith.index_cast %11 : i32 to index
    %c0_11 = arith.constant 0 : index
    %13 = vector.load %arg1[%12, %c0_11] : memref<128x128xbf16, #tpu.memory_space<vmem>>, vector<64x128xbf16>
    %cst_12 = arith.constant dense<0.000000e+00> : vector<64x128xf32>
    %14 = tpu.matmul %13, %7, %cst_12 {dimension_numbers = #tpu.dot_dimension_numbers<[1], [0], [0], [1], [0, 0, 1, 1], [], []>} : vector<64x128xbf16>, vector<128x128xbf16>, vector<64x128xf32> -> vector<64x128xf32>
    %15 = vector.broadcast %8 : vector<1x128xf32> to vector<64x128xf32>
    %16 = arith.addf %14, %15 : vector<64x128xf32>
    %17 = arith.index_cast %11 : i32 to index
    %c0_13 = arith.constant 0 : index
    %18 = vector.load %arg4[%17, %c0_13] : memref<128x16xbf16, #tpu.memory_space<vmem>>, vector<64x16xbf16>
    %cst_14 = arith.constant dense<0.000000e+00> : vector<64x128xf32>
    %19 = tpu.matmul %18, %6, %cst_14 {dimension_numbers = #tpu.dot_dimension_numbers<[1], [0], [0], [1], [0, 0, 1, 1], [], []>} : vector<64x16xbf16>, vector<16x128xbf16>, vector<64x128xf32> -> vector<64x128xf32>
    %20 = arith.addf %16, %19 : vector<64x128xf32>
    %21 = math.tanh %20 : vector<64x128xf32>
    %22 = vector.broadcast %9 : vector<1x128xf32> to vector<64x128xf32>
    %23 = arith.mulf %21, %22 : vector<64x128xf32>
    %cst_15 = arith.constant dense<0.000000e+00> : vector<64xf32>
    %24 = vector.multi_reduction <add>, %23, %cst_15 [1] : vector<64x128xf32> to vector<64xf32>
    %25 = vector.shape_cast %24 : vector<64xf32> to vector<64x1xf32>
    %26 = arith.index_cast %11 : i32 to index
    %c0_16 = arith.constant 0 : index
    %27 = vector.load %arg14[%26, %c0_16] : memref<128x1xf32, #tpu.memory_space<vmem>>, vector<64x1xf32>
    tpu.vector_store %arg14[%26, %c0_16], %25 {strides = array<i32>} : memref<128x1xf32, #tpu.memory_space<vmem>>, vector<64x1xf32>,
    %c1_i32 = arith.constant 1 : i32
    %c64_i32_17 = arith.constant 64 : i32
    %28 = arith.muli %c1_i32, %c64_i32_17 : i32
    %29 = tpu.assume_multiple %28, 64 : i32
    %30 = arith.index_cast %29 : i32 to index
    %c0_18 = arith.constant 0 : index
    %31 = vector.load %arg1[%30, %c0_18] : memref<128x128xbf16, #tpu.memory_space<vmem>>, vector<64x128xbf16>
    %cst_19 = arith.constant dense<0.000000e+00> : vector<64x128xf32>
    %32 = tpu.matmul %31, %7, %cst_19 {dimension_numbers = #tpu.dot_dimension_numbers<[1], [0], [0], [1], [0, 0, 1, 1], [], []>} : vector<64x128xbf16>, vector<128x128xbf16>, vector<64x128xf32> -> vector<64x128xf32>
    %33 = vector.broadcast %8 : vector<1x128xf32> to vector<64x128xf32>
    %34 = arith.addf %32, %33 : vector<64x128xf32>
    %35 = arith.index_cast %29 : i32 to index
    %c0_20 = arith.constant 0 : index
    %36 = vector.load %arg4[%35, %c0_20] : memref<128x16xbf16, #tpu.memory_space<vmem>>, vector<64x16xbf16>
    %cst_21 = arith.constant dense<0.000000e+00> : vector<64x128xf32>
    %37 = tpu.matmul %36, %6, %cst_21 {dimension_numbers = #tpu.dot_dimension_numbers<[1], [0], [0], [1], [0, 0, 1, 1], [], []>} : vector<64x16xbf16>, vector<16x128xbf16>, vector<64x128xf32> -> vector<64x128xf32>
    %38 = arith.addf %34, %37 : vector<64x128xf32>
    %39 = math.tanh %38 : vector<64x128xf32>
    %40 = vector.broadcast %9 : vector<1x128xf32> to vector<64x128xf32>
    %41 = arith.mulf %39, %40 : vector<64x128xf32>
    %cst_22 = arith.constant dense<0.000000e+00> : vector<64xf32>
    %42 = vector.multi_reduction <add>, %41, %cst_22 [1] : vector<64x128xf32> to vector<64xf32>
    %43 = vector.shape_cast %42 : vector<64xf32> to vector<64x1xf32>
    %44 = arith.index_cast %29 : i32 to index
    %c0_23 = arith.constant 0 : index
    %45 = vector.load %arg14[%44, %c0_23] : memref<128x1xf32, #tpu.memory_space<vmem>>, vector<64x1xf32>
    tpu.vector_store %arg14[%44, %c0_23], %43 {strides = array<i32>} : memref<128x1xf32, #tpu.memory_space<vmem>>, vector<64x1xf32>,
    %c2_i32 = arith.constant 2 : i32
    %c0_24 = arith.constant 0 : index
    %c0_25 = arith.constant 0 : index
    %46 = vector.load %arg5[%c0_24, %c0_25] : memref<16x128xbf16, #tpu.memory_space<vmem>>, vector<16x128xbf16>
    %47 = arith.extf %46 : vector<16x128xbf16> to vector<16x128xf32>
    %c0_26 = arith.constant 0 : index
    %c0_27 = arith.constant 0 : index
    %48 = vector.load %arg6[%c0_26, %c0_27] : memref<128x8xbf16, #tpu.memory_space<vmem>>, vector<128x8xbf16>
    %49 = arith.extf %48 : vector<128x8xbf16> to vector<128x8xf32>
    %c0_28 = arith.constant 0 : index
    %c0_29 = arith.constant 0 : index
    %50 = vector.load %arg14[%c0_28, %c0_29] : memref<128x1xf32, #tpu.memory_space<vmem>>, vector<128x1xf32>
    %51 = vector.broadcast %50 : vector<128x1xf32> to vector<128x8xf32>
    %52 = arith.mulf %51, %49 : vector<128x8xf32>
    %cst_30 = arith.constant dense<0.000000e+00> : vector<16x8xf32>
    %53 = tpu.matmul %47, %52, %cst_30 {dimension_numbers = #tpu.dot_dimension_numbers<[1], [0], [0], [1], [0, 0, 1, 1], [], []>} : vector<16x128xf32>, vector<128x8xf32>, vector<16x8xf32> -> vector<16x8xf32>
    %c0_31 = arith.constant 0 : index
    %c0_32 = arith.constant 0 : index
    %54 = vector.load %arg3[%c0_31, %c0_32] : memref<16x8xf32, #tpu.memory_space<vmem>>, vector<16x8xf32>
    %55 = arith.addf %53, %54 : vector<16x8xf32>
    %cst_33 = arith.constant dense<0xFF800000> : vector<16xf32>
    %56 = vector.multi_reduction <maximumf>, %55, %cst_33 [1] : vector<16x8xf32> to vector<16xf32>
    %57 = vector.shape_cast %56 : vector<16xf32> to vector<16x1xf32>
    %58 = vector.broadcast %57 : vector<16x1xf32> to vector<16x8xf32>
    %59 = arith.subf %55, %58 : vector<16x8xf32>
    %60 = math.exp %59 : vector<16x8xf32>
    %cst_34 = arith.constant dense<0.000000e+00> : vector<16xf32>
    %61 = vector.multi_reduction <add>, %60, %cst_34 [1] : vector<16x8xf32> to vector<16xf32>
    %62 = vector.shape_cast %61 : vector<16xf32> to vector<16x1xf32>
    %63 = tpu.reciprocal %62 : vector<16x1xf32> -> vector<16x1xf32>
    %64 = vector.broadcast %63 : vector<16x1xf32> to vector<16x8xf32>
    %65 = arith.mulf %60, %64 : vector<16x8xf32>
    %66 = arith.truncf %65 : vector<16x8xf32> to vector<16x8xbf16>
    %c0_35 = arith.constant 0 : index
    %c0_36 = arith.constant 0 : index
    %67 = vector.load %arg7[%c0_35, %c0_36] : memref<8x128xbf16, #tpu.memory_space<vmem>>, vector<8x128xbf16>
    %cst_37 = arith.constant dense<0.000000e+00> : vector<16x128xf32>
    %68 = tpu.matmul %66, %67, %cst_37 {dimension_numbers = #tpu.dot_dimension_numbers<[1], [0], [0], [1], [0, 0, 1, 1], [], []>} : vector<16x8xbf16>, vector<8x128xbf16>, vector<16x128xf32> -> vector<16x128xf32>
    %69 = arith.mulf %68, %47 : vector<16x128xf32>
    %70 = arith.truncf %69 : vector<16x128xf32> to vector<16x128xbf16>
    %c0_38 = arith.constant 0 : index
    %c0_39 = arith.constant 0 : index
    %71 = vector.load %arg1[%c0_38, %c0_39] : memref<128x128xbf16, #tpu.memory_space<vmem>>, vector<128x128xbf16>
    %cst_40 = arith.constant dense<0.000000e+00> : vector<16x128xf32>
    %72 = tpu.matmul %70, %71, %cst_40 {dimension_numbers = #tpu.dot_dimension_numbers<[1], [0], [0], [1], [0, 0, 1, 1], [], []>} : vector<16x128xbf16>, vector<128x128xbf16>, vector<16x128xf32> -> vector<16x128xf32>
    %c0_41 = arith.constant 0 : index
    %c0_42 = arith.constant 0 : index
    %73 = vector.load %arg13[%c0_41, %c0_42] : memref<16x128xf32, #tpu.memory_space<vmem>>, vector<16x128xf32>
    tpu.vector_store %arg13[%c0_41, %c0_42], %72 {strides = array<i32>} : memref<16x128xf32, #tpu.memory_space<vmem>>, vector<16x128xf32>,
    return
  }
  func.func @transform_0(%arg0: i32) -> (i32, i32) {
    %c0_i32 = arith.constant 0 : i32
    %c0_i32_0 = arith.constant 0 : i32
    return %arg0, %c0_i32 : i32, i32
  }
  func.func @transform_1(%arg0: i32) -> (i32, i32) {
    %c0_i32 = arith.constant 0 : i32
    %c0_i32_0 = arith.constant 0 : i32
    return %arg0, %c0_i32 : i32, i32
  }
  func.func @transform_2(%arg0: i32) -> (i32, i32) {
    %c0_i32 = arith.constant 0 : i32
    %c0_i32_0 = arith.constant 0 : i32
    return %arg0, %c0_i32 : i32, i32
  }
  func.func @transform_3(%arg0: i32) -> (i32, i32) {
    %c0_i32 = arith.constant 0 : i32
    %c0_i32_0 = arith.constant 0 : i32
    %c0_i32_1 = arith.constant 0 : i32
    return %c0_i32, %c0_i32_0 : i32, i32
  }
  func.func @transform_4(%arg0: i32) -> (i32, i32) {
    %c0_i32 = arith.constant 0 : i32
    %c0_i32_0 = arith.constant 0 : i32
    %c0_i32_1 = arith.constant 0 : i32
    return %c0_i32, %c0_i32_0 : i32, i32
  }
  func.func @transform_5(%arg0: i32) -> (i32, i32) {
    %c0_i32 = arith.constant 0 : i32
    %c0_i32_0 = arith.constant 0 : i32
    %c0_i32_1 = arith.constant 0 : i32
    return %c0_i32, %c0_i32_0 : i32, i32
  }
  func.func @transform_6(%arg0: i32) -> (i32, i32) {
    %c0_i32 = arith.constant 0 : i32
    %c0_i32_0 = arith.constant 0 : i32
    %c0_i32_1 = arith.constant 0 : i32
    return %c0_i32, %c0_i32_0 : i32, i32
  }
  func.func @transform_7(%arg0: i32) -> (i32, i32) {
    %c0_i32 = arith.constant 0 : i32
    %c0_i32_0 = arith.constant 0 : i32
    %c0_i32_1 = arith.constant 0 : i32
    return %c0_i32, %c0_i32_0 : i32, i32
  }
  func.func @transform_8(%arg0: i32) -> (i32, i32) {
    %c0_i32 = arith.constant 0 : i32
    %c0_i32_0 = arith.constant 0 : i32
    %c0_i32_1 = arith.constant 0 : i32
    return %c0_i32, %c0_i32_0 : i32, i32
  }
  func.func @transform_9(%arg0: i32) -> (i32, i32) {
    %c0_i32 = arith.constant 0 : i32
    %c0_i32_0 = arith.constant 0 : i32
    %c0_i32_1 = arith.constant 0 : i32
    return %c0_i32, %c0_i32_0 : i32, i32
  }
  func.func @transform_10(%arg0: i32) -> (i32, i32) {
    %c0_i32 = arith.constant 0 : i32
    %c0_i32_0 = arith.constant 0 : i32
    %c0_i32_1 = arith.constant 0 : i32
    return %c0_i32, %c0_i32_0 : i32, i32
  }
  func.func @transform_11(%arg0: i32) -> (i32, i32) {
    %c0_i32 = arith.constant 0 : i32
    %c0_i32_0 = arith.constant 0 : i32
    %c0_i32_1 = arith.constant 0 : i32
    return %c0_i32, %c0_i32_0 : i32, i32
  }
  func.func @transform_12(%arg0: i32) -> (i32, i32) {
    %c0_i32 = arith.constant 0 : i32
    %c0_i32_0 = arith.constant 0 : i32
    return %arg0, %c0_i32 : i32, i32
  }
}

</mosaic_0001>

<bundles_post_ra>
// kernel: tpu_custom_call.1
= control target key start
LH: loop header
LB: loop body
LE: loop exit
PB: predicated region body
PF: predicated region fallthrough
CT: control target
= control target key end

     0   :  { %s2982_s0 = inlined_call_operand.vmem [shape: bf16[256,128], index: 0, kind: input, shape index: {}]   ;;  %s2983_s1 = inlined_call_operand.hbm [shape: f32[32,64], index: 1, kind: input, shape index: {}]   ;;  %s2984_s2 = inlined_call_operand.vmem [shape: f32[32,8], index: 2, kind: input, shape index: {}]   ;;  %s2985_s3 = inlined_call_operand.vmem [shape: bf16[128,16], index: 3, kind: input, shape index: {}]   ;;  %s2986_s4 = inlined_call_operand.hbm [shape: bf16[16,128], index: 4, kind: input, shape index: {}]   ;;  %s2987_s5 = inlined_call_operand.vmem [shape: bf16[128,8], index: 5, kind: input, shape index: {}]   ;;  %s2988_s6 = inlined_call_operand.vmem [shape: bf16[8,128], index: 6, kind: input, shape index: {}]   ;;  %s2989_s7 = inlined_call_operand.vmem [shape: bf16[128,128], index: 7, kind: input, shape index: {}]   ;;  %s2990_s8 = inlined_call_operand.vmem [shape: f32[1,128], index: 8, kind: input, shape index: {}]   ;;  %s2991_s9 = inlined_call_operand.hbm [shape: f32[64,128], index: 9, kind: input, shape index: {}]   ;;  %s2992_s10 = inlined_call_operand.vmem [shape: f32[1,128], index: 10, kind: input, shape index: {}]   ;;  %s2993_s11 = inlined_call_operand.vmem [shape: f32[1,128], index: 11, kind: input, shape index: {}]   ;;  %s2994_s12 = inlined_call_operand.hbm [shape: f32[32,128], index: 12, kind: output, shape index: {}]  }
   0x1   :  { %3003 = sst [smem:[#allocation15_spill]] %s2988_s6 }
   0x2   :  { %3004 = sst [smem:[#allocation16_spill]] %s2994_s12 }
   0x3   :  { %17 = vsyncpa [#allocation4], 0 }
   0x4   :  { %19 = vsyncpa [#allocation4 + $0x1], 0 }
   0x5   :  { %20 = vsyncpa [#allocation7], 0 }
   0x6   :  { %21 = vsyncpa [#allocation5], 0 }
   0x7   :  { %23 = vsyncpa [#allocation5 + $0x1], 0  ;;  %s2545_s21 = smov 0   ;;  %s2547_s22 = smov 0  }
   0x8   :  { %s2549_s23 = smov 0   ;;  %s2551_s24 = smov 0  }
   0x9 LB: > { %3005 = sst [smem:[#allocation13_spill]] %s2453_s21  ;;  %s2566_s25 = sadd.s32 4294967295, %s2465_s24   ;;  %s2465_s24 = sphi %s2551_s24, %s3029_s24   ;;  %s2461_s23 = sphi %s2549_s23, %s3028_s23   ;;  %s2457_s22 = sphi %s2547_s22, %s3027_s22   ;;  %s2453_s21 = sphi %s2545_s21, %s3026_s21  }
   0xa   : > { %s1729_s26 = sadd.s32 4294967294, %s2465_s24   ;;  %p75_p0 = scmp.ne.s32.totalorder %s2457_s22, %s2453_s21 }
   0xb   : > { %p2996_p1 = scmp.eq.s32.totalorder %s2566_s25, 0  ;;  %p320_p3 = scmp.eq.s32.totalorder %s1729_s26, 1 }
   0xc   : > { %p1730_p5 = scmp.ge.s32.totalorder %s2465_s24, 1  ;;  %p327_p7 = scmp.lt.s32.totalorder %s2465_s24, 3 }
   0xd   : > { %p2575_p4 = por %p2996_p1, %p75_p0  ;;  %p2580_p6 = por %p320_p3, %p75_p0 }
   0xe   : > { %p2585_p8 = pnand %p1730_p5, %p327_p7  ;;  %s2467_s30 = smov [#allocation6]  }
   0xf   : > { %s3006_s27 = scalar_select %p2575_p4, 1, 0 }
  0x10   : > { %s3007_s28 = scalar_select %p2580_p6, 1, 0 }
  0x11   : > { %s342_s13 = sshll.u32 %s2467_s30, 4  ;;  %p2171_p9 = pneg %p2585_p8  ;;  %s2589_s13 = int_to_ptr.vmem [resolvable:$true] %s342_s13 }
  0x12   : > { %3008 = sst [smem:[#allocation14_spill]] %s3007_s28  ;;  %s2468_s15 = smov [#allocation8]  }
  0x13   : > { %p2596_p11 = pnand %p2171_p9, %p2996_p1  ;;  %s367_s16 = sshll.u32 %s2468_s15, 4  ;;  %s2600_s16 = int_to_ptr.vmem [resolvable:$true] %s367_s16 }
  0x14   : > { %s2309_s19 = scalar_lea.hbm %s2986_s4, 128 }
  0x15   : > { %p2310_p12 = scmp.ne.s32.totalorder %s2986_s4, %s2309_s19  ;;  %p2311_p13 = pneg %p2596_p11 }
  0x16   : > { %p2316_p5 = scmp.lt.u32.totalorder %s2309_s19, %s2986_s4 }
  0x17   : > { %p2312_p0 = pnand %p2311_p13, %p2310_p12 }
  0x19   : > { %p2313_p3 = pneg %p2312_p0 }
  0x1b   : > { %p2318_p7 = pnand %p2316_p5, %p2313_p3 }
  0x1d   : > { %2321 = shalt.err (!%p2318_p7)
}
  0x1e   : > { %s2322_s15 = scalar_lea.vmem %s2589_s13, 128  ;;  %p2330_p2 = scmp.lt.s32.totalorder %s2589_s13, %s2589_s13 }
  0x1f   : > { %p2323_p9 = scmp.ne.s32.totalorder %s2589_s13, %s2322_s15  ;;  %p2331_p12 = scmp.lt.s32.totalorder %s2322_s15, %s2322_s15 }
  0x21   : > { %p2325_p10 = pnand %p2323_p9, %p2311_p13  ;;  %p2332_p0 = por %p2331_p12, %p2330_p2 }
  0x23   : > { %p2326_p1 = pneg %p2325_p10 }
  0x25   : > { %p2333_p6 = pnand %p2332_p0, %p2326_p1 }
  0x27   : > { %2336 = shalt.err (!%p2333_p6)
}
  0x28   : > { %s2469_s28 = smov 64   ;;  %s2470_s17 = smov 4  }
  0x29   : > { %2174 = dma.hbm_to_vmem [thread:$0]  (!%p2596_p11), %s2986_s4, 128, %s2589_s13, [#allocation7], %s2469_s28, %s2469_s28, %s2470_s17  }
  0x2a   : > { %s2337_s30 = scalar_lea.hbm %s2991_s9, 1024 }
  0x2b   : > { %p2338_p2 = scmp.ne.s32.totalorder %s2991_s9, %s2337_s30  ;;  %p2344_p10 = scmp.lt.u32.totalorder %s2337_s30, %s2991_s9 }
  0x2d   : > { %p2340_p1 = pnand %p2338_p2, %p2311_p13 }
  0x2f   : > { %p2341_p6 = pneg %p2340_p1 }
  0x31   : > { %p2346_p3 = pnand %p2344_p10, %p2341_p6 }
  0x33   : > { %2349 = shalt.err (!%p2346_p3)
}
  0x34   : > { %s2350_s13 = scalar_lea.vmem %s2600_s16, 1024  ;;  %p2358_p12 = scmp.lt.s32.totalorder %s2600_s16, %s2600_s16 }
  0x35   : > { %p2351_p5 = scmp.ne.s32.totalorder %s2600_s16, %s2350_s13  ;;  %p2359_p0 = scmp.lt.s32.totalorder %s2350_s13, %s2350_s13 }
  0x37   : > { %p2353_p7 = pnand %p2351_p5, %p2311_p13  ;;  %p2360_p2 = por %p2359_p0, %p2358_p12 }
  0x39   : > { %p2354_p9 = pneg %p2353_p7 }
  0x3b   : > { %p2361_p1 = pnand %p2360_p2, %p2354_p9 }
  0x3d   : > { %2364 = shalt.err (!%p2361_p1)
}
  0x3e   : > { %s2999_s6 = smov 128   ;;  %s3000_s12 = smov 8  }
  0x3f   : > { %2177 = dma.hbm_to_vmem [thread:$0]  (!%p2596_p11), %s2991_s9, 1024, %s2600_s16, [#allocation7], %s2999_s6, %s2999_s6, %s3000_s12  }
  0x40   : > { %s2658_s17 = sadd.s32 1, %s2465_s24   ;;  %s62_s19 = sadd.s32 1, %s2461_s23 }
  0x41   : > { %s59_s18 = ssub.s32 %s2465_s24, %s2658_s17  ;;  %p69_p6 = scmp.ne.s32.totalorder %s2461_s23, %s2457_s22 }
  0x42   : > { %p60_p13 = scmp.eq.s32.totalorder %s59_s18, 0  ;;  %p70_p10 = scmp.eq.s32.totalorder %s2465_s24, 0 }
  0x43   : > { %p3011_p5 = scmp.eq.s32.totalorder %s2566_s25, 1  ;;  %p2188_p9 = scmp.lt.s32.totalorder %s2465_s24, 2 }
  0x44   : > { %s2667_s20 = scalar_select %p60_p13, %s2461_s23, %s62_s19  }
  0x45   : > { %p71_p3 = por %p70_p10, %p69_p6  ;;  %p2671_p7 = por %p3011_p5, %p69_p6 }
  0x46   : > { %s396_s26 = sand.u32 1, %s2461_s23   ;;  %s1813_s16 = sshll.u32 %s2465_s24, 8 }
  0x47   : > { %s3012_s14 = scalar_select %p2671_p7, 1, 0 }
  0x48   : > { %s1734_s30 = sshll.u32 %s396_s26, 4  ;;  %s2681_s21 = scalar_lea.hbm %s2983_s1, %s1813_s16 }
  0x49   : > { %s400_s28 = scalar_lea.vmem [#allocation3], %s1734_s30  ;;  %p2685_p11 = pnand %p2188_p9, %p71_p3 }
  0x4a   : > { %s407_s18 = sshll.u32 %s400_s28, 4  ;;  %s2689_s6 = scalar_lea.sflag [#allocation4], %s396_s26  ;;  %s2683_s18 = int_to_ptr.vmem [resolvable:$true] %s407_s18 }
  0x4b   : > { %s2365_s12 = scalar_lea.hbm %s2681_s21, 256  ;;  %p2367_p0 = pneg %p2685_p11 }
  0x4c   : > { %p2366_p12 = scmp.ne.s32.totalorder %s2681_s21, %s2365_s12  ;;  %s2370_s15 = scalar_lea.hbm %s2983_s1, 512 }
  0x4d   : > { %p2371_p13 = scmp.lt.u32.totalorder %s2681_s21, %s2983_s1  ;;  %p2372_p6 = scmp.lt.u32.totalorder %s2370_s15, %s2365_s12 }
  0x4e   : > { %p2368_p2 = pnand %p2367_p0, %p2366_p12  ;;  %p2374_p3 = scmp.lt.u32.totalorder %s2365_s12, %s2681_s21 }
  0x4f   : > { %p2373_p10 = por %p2372_p6, %p2371_p13 }
  0x50   : > { %p2369_p1 = pneg %p2368_p2 }
  0x51   : > { %p2375_p5 = por %p2374_p3, %p2373_p10 }
  0x53   : > { %p2376_p9 = pnand %p2375_p5, %p2369_p1 }
  0x55   : > { %2379 = shalt.err (!%p2376_p9)
}
  0x56   : > { %s2380_s26 = scalar_lea.vmem %s2683_s18, 256  ;;  %s2473_s30 = smov [#allocation3]  }
  0x57   : > { %p2381_p12 = scmp.ne.s32.totalorder %s2683_s18, %s2380_s26  ;;  %s2385_s16 = sshll.u32 %s2473_s30, 4  ;;  %s2386_s16 = int_to_ptr.vmem [resolvable:$false] %s2385_s16 }
  0x58   : > { %s2387_s13 = scalar_lea.vmem %s2386_s16, 512  ;;  %p2388_p4 = scmp.lt.s32.totalorder %s2683_s18, %s2386_s16 }
  0x59   : > { %p2383_p2 = pnand %p2381_p12, %p2367_p0  ;;  %p2389_p13 = scmp.lt.s32.totalorder %s2387_s13, %s2380_s26 }
  0x5b   : > { %p2384_p7 = pneg %p2383_p2  ;;  %p2390_p6 = por %p2389_p13, %p2388_p4 }
  0x5d   : > { %p2391_p10 = pnand %p2390_p6, %p2384_p7 }
  0x5f   : > { %2394 = shalt.err (!%p2391_p10)
}
  0x60   : > { %s3014_s12 = smov 8   ;;  %s3015_s15 = smov 128  }
  0x61   : > { %2181 = dma.hbm_to_vmem [thread:$0]  (!%p2685_p11), %s2681_s21, 256, %s2683_s18, %s2689_s6, %s3015_s15, %s3015_s15, %s3014_s12  }
  0x62   : > { %428 = sbr.rel (%p2585_p8) target bundleno = 1881 (0x759), region = 68  ;;  %s2723_s28 = sand.u32 (!%p2585_p8), 1, %s2457_s22  }
  0x63   : > { %s1738_s26 = sshll.u32 (!%p2585_p8), %s2723_s28, 4  ;;  %s431_s30 = scalar_lea.sflag (!%p2585_p8), [#allocation4], %s2723_s28 }
  0x64   : > { %s2729_s19 = scalar_lea.vmem (!%p2585_p8), [#allocation3], %s1738_s26  ;;  %p3016_p4 = scmp.ne.s32.totalorder (!%p2585_p8), %s3006_s27, 0 }
  0x69   : > { %2440 = dma.done.wait (%p3016_p4), %s431_s30, 256  }
  0x6a   : > { %2442 = vsyncadd (%p3016_p4), %s431_s30, 4294967040  ;;  %p3017_p7 = scmp.eq.s32.totalorder %s2566_s25, 0 }
  0x6c   : > { %2444 = dma.done.wait (%p3017_p7), [#allocation7], 1152   ;;  %p3018_p8 = pmov %p3017_p7 }
  0x6d   : > { %s1742_s29 = sshll.u32 %s2566_s25, 4  ;;  %v510_v0 = vld [vmem:[#allocation8] sm:$0xff]  ;;  %v511_v1 = vld [vmem:[#allocation8 + $0x8] sm:$0xff]  ;;  %v512_v2 = vld [vmem:[#allocation8 + $0x10] sm:$0xff]  ;;  %vm525_vm0 = vcmask 523264   ;;  %vm805_vm1 = vcmask 130048  }
  0x6e   : > { %2446 = vsyncadd (%p3018_p8), [#allocation7], 4294966144  ;;  %p494_p11 = scmp.lt.s32.totalorder %s1742_s29, 31  ;;  %v2079_v3 = vpack.c.bf16 %v511_v1, %v510_v0  ;;  %v513_v4 = vld [vmem:[#allocation8 + $0x18] sm:$0xff]  ;;  %v514_v6 = vld [vmem:[#allocation8 + $0x20] sm:$0xff]  ;;  %vm929_vm2 = vcmask 7168  }
  0x6f   : > { %v2083_v5 = vpack.c.bf16 %v513_v4, %v512_v2  ;;  %v515_v7 = vld [vmem:[#allocation8 + $0x28] sm:$0xff]  ;;  %v516_v9 = vld [vmem:[#allocation8 + $0x30] sm:$0xff]  ;;  %v2237_v10 = vld [vmem:[%s2989_s7] sm:$0xff]   ;;  %s1744_s15 = sshll.u32 %s2566_s25, 1  ;;  %vm1416_vm3 = vcmask 64512   ;;  %s3019_s13 = sld [smem:[#allocation15_spill]] }
  0x70   : > { %v508_v8 = vld [vmem:[%s2729_s19] sm:$0xff]  ;;  %2080 = vmatprep.subr.bf16.mxu1 %v2079_v3  ;;  %s3031_s29 = smov (!%p494_p11, %s1742_s29), 31  ;;  %v2087_v11 = vpack.c.bf16 %v515_v7, %v514_v6  ;;  %v2238_v13 = vld [vmem:[%s2989_s7 + $0x8] sm:$0xff]   ;;  %1984 = vmatprep.subr.bf16.mxu0 %v2237_v10  ;;  %v2240_v16 = vld [vmem:[%s2989_s7 + $0x18] sm:$0xff]   ;;  %p501_p0 = scmp.lt.s32.totalorder %s1744_s15, 3  ;;  %vm1444_vm4 = vcmask 1043456  }
  0x71   : > { %1947 = vmatprep.mubr.msk.f32.mxu1 %vm525_vm0, %v508_v8  ;;  %2082 = vmatpush3.bf16.msra.mxu1 %v2079_v3  ;;  %v517_v12 = vld [vmem:[#allocation8 + $0x38] sm:$0xff]  ;;  %s1743_s16 = sshll.u32 %s3031_s29, 2  ;;  %v2239_v15 = vld [vmem:[%s2989_s7 + $0x10] sm:$0xff]   ;;  %v509_v17 = vld [vmem:[%s2729_s19 + $0x8] sm:$0xff]  ;;  %vm2476_vm5 = vmmov 0   ;;  %s492_s19 = scalar_lea.vmem [#allocation9], %s1738_s26 }
  0x72   : > { %2084 = vmatprep.subr.bf16.mxu1 %v2083_v5  ;;  %1985 = vmatpush3.bf16.msra.mxu0 %v2237_v10  ;;  %v2091_v14 = vpack.c.bf16 %v517_v12, %v516_v9  ;;  %s2754_s27 = scalar_lea.vmem %s2982_s0, %s1743_s16  ;;  %v2241_v19 = vld [vmem:[%s2989_s7 + $0x20] sm:$0xff]   ;;  %v2242_v20 = vld [vmem:[%s2989_s7 + $0x28] sm:$0xff]   ;;  %v2243_v21 = vld [vmem:[%s2989_s7 + $0x30] sm:$0xff]   ;;  %s3033_s15 = smov (!%p501_p0, %s1744_s15), 3 }
  0x73   : > { %1986 = vmatprep.subr.bf16.mxu0 %v2238_v13  ;;  %v2245_v18 = vld [vmem:[%s2754_s27] sm:$0xff]   ;;  %v2244_v22 = vld [vmem:[%s2989_s7 + $0x38] sm:$0xff]   ;;  %v2246_v23 = vld [vmem:[%s2754_s27 + $0x8] sm:$0xff]   ;;  %s1745_s30 = sshll.u32 %s3033_s15, 3  ;;  %s1613_s12 = sshll.u32 %s492_s19, 4  ;;  %s2933_s12 = int_to_ptr.vmem [resolvable:$true] %s1613_s12 }
  0x74   : > { %v2249_v24 = vld [vmem:[%s2754_s27 + $0x20] sm:$0xff]   ;;  %v2247_v25 = vld [vmem:[%s2754_s27 + $0x10] sm:$0xff]   ;;  %v2250_v26 = vld [vmem:[%s2754_s27 + $0x28] sm:$0xff]   ;;  %s504_s21 = scalar_lea.vmem %s2984_s2, %s1745_s30  ;;  %s1814_s15 = sshll.u32 %s2566_s25, 8 }
  0x75   : > { %2086 = vmatpush3.bf16.msra.mxu1 %v2083_v5  ;;  %v2248_v27 = vld [vmem:[%s2754_s27 + $0x18] sm:$0xff]   ;;  %2000 = vmatprep.mubr.bf16.mxu0 %v2249_v24  ;;  %v2254_v28 = vld [vmem:[%s2754_s27 + $0x30] sm:$0xff]   ;;  %v2251_v29 = vld [vmem:[%s2985_s3] sm:$0xff]   ;;  %s3020_s6 = sld [smem:[#allocation16_spill]]  ;;  %s2395_s26 = scalar_lea.vmem %s2933_s12, 256 }
  0x76   : > { %2088 = vmatprep.subr.bf16.mxu1 %v2087_v11  ;;  %1987 = vmatpush3.bf16.msra.mxu0 %v2238_v13  ;;  %v2256_v30 = vld [vmem:[%s2754_s27 + $0x38] sm:$0xff]   ;;  %v2257_v31 = vld [vmem:[%s2985_s3 + $0x20] sm:$0xff]   ;;  %v2252_v38 = vld [vmem:[%s2985_s3 + $0x8] sm:$0xff]   ;;  %p2396_p1 = scmp.ne.s32.totalorder %s2933_s12, %s2395_s26  ;;  %p3021_p3 = scmp.ne.s32.totalorder %s3012_s14, 0 }
  0x77   : > { %1988 = vmatprep.subr.bf16.mxu0 %v2239_v15  ;;  %v1746_v32 = vld [vmem:[%s2992_s10] ss:$0 sm:$0xff]  ;;  %v2258_v39 = vld [vmem:[%s2985_s3 + $0x28] sm:$0xff]   ;;  %v2253_v40 = vld [vmem:[%s2985_s3 + $0x10] sm:$0xff]   ;;  %s2477_s25 = smov [#allocation9]  }
  0x78   : > { %v2259_v41 = vld [vmem:[%s2985_s3 + $0x30] sm:$0xff]   ;;  %v2255_v42 = vld [vmem:[%s2985_s3 + $0x18] sm:$0xff]   ;;  %v2819_v44 = vld [vmem:[%s2990_s8] ss:$0 sm:$0xff]  ;;  %p2397_p5 = pnand %p2396_p1, %p3021_p3  ;;  %s2399_s18 = sshll.u32 %s2477_s25, 4  ;;  %s2400_s18 = int_to_ptr.vmem [resolvable:$false] %s2399_s18 }
  0x79   : > { %2090 = vmatpush3.bf16.msra.mxu1 %v2087_v11  ;;  %v2260_v43 = vld [vmem:[%s2985_s3 + $0x38] sm:$0xff]   ;;  %v2830_v2 = vld [vmem:[%s2993_s11] ss:$0 sm:$0xff]  ;;  %s2401_s16 = scalar_lea.vmem %s2400_s18, 512  ;;  %p2402_p12 = scmp.lt.s32.totalorder %s2933_s12, %s2400_s18 }
  0x7a   : > { %2092 = vmatprep.subr.bf16.mxu1 %v2091_v14  ;;  %1989 = vmatpush3.bf16.msra.mxu0 %v2239_v15  ;;  %p2398_p9 = pneg %p2397_p5  ;;  %p2403_p2 = scmp.lt.s32.totalorder %s2401_s16, %s2395_s26 }
  0x7b   : > { %1990 = vmatprep.subr.bf16.mxu0 %v2240_v16  ;;  %s2938_s29 = scalar_lea.hbm %s3020_s6, %s1814_s15 }
  0x7c   : > { %p2404_p13 = por %p2403_p2, %p2402_p12 }
  0x7d   : > { %2094 = vmatpush3.bf16.msra.mxu1 %v2091_v14 }
  0x7e   : > { %1950 = vmatprep.subr.bf16.mxu1 %v2237_v10  ;;  %1991 = vmatpush3.bf16.msra.mxu0 %v2240_v16  ;;  %p2405_p6 = pnand %p2404_p13, %p2398_p9 }
  0x7f   : > { %1992 = vmatprep.subr.bf16.mxu0 %v2241_v19 }
  0x80   : > { %1948 = vmatmul.mubr.msk.f32.vlgmr.msra.gmra.mrb[0].mxu1 %vm525_vm0, %v509_v17 }
  0x81   : > { %1951 = vmatpush3.bf16.msra.mxu1 %v2237_v10  ;;  %1966 = vmatprep.mubr.bf16.mxu1 %v2245_v18 }
  0x82   : > { %1952 = vmatprep.subr.bf16.mxu1 %v2238_v13  ;;  %1993 = vmatpush3.bf16.msra.mxu0 %v2241_v19 }
  0x83   : > { %1994 = vmatprep.subr.bf16.mxu0 %v2242_v20 }
  0x85   : > { %1953 = vmatpush3.bf16.msra.mxu1 %v2238_v13 }
  0x86   : > { %1954 = vmatprep.subr.bf16.mxu1 %v2239_v15  ;;  %1995 = vmatpush3.bf16.msra.mxu0 %v2242_v20 }
  0x87   : > { %1996 = vmatprep.subr.bf16.mxu0 %v2243_v21 }
  0x89   : > { %1955 = vmatpush3.bf16.msra.mxu1 %v2239_v15 }
  0x8a   : > { %1956 = vmatprep.subr.bf16.mxu1 %v2240_v16  ;;  %1997 = vmatpush3.bf16.msra.mxu0 %v2243_v21 }
  0x8b   : > { %1998 = vmatprep.subr.bf16.mxu0 %v2244_v22 }
  0x8d   : > { %1957 = vmatpush3.bf16.msra.mxu1 %v2240_v16 }
  0x8e   : > { %1958 = vmatprep.subr.bf16.mxu1 %v2241_v19  ;;  %1999 = vmatpush3.bf16.msra.mxu0 %v2244_v22 }
  0x91   : > { %1959 = vmatpush3.bf16.msra.mxu1 %v2241_v19  ;;  %2001 = vmatmul.mubr.bf16.vlgmr.msra.gmra.mrb[0].mxu0 %v2250_v26 }
  0x92   : > { %1960 = vmatprep.subr.bf16.mxu1 %v2242_v20  ;;  %2004 = vmatprep.mubr.bf16.mxu0 %v2254_v28 }
  0x95   : > { %1961 = vmatpush3.bf16.msra.mxu1 %v2242_v20 }
  0x96   : > { %1962 = vmatprep.subr.bf16.mxu1 %v2243_v21 }
  0x99   : > { %1963 = vmatpush3.bf16.msra.mxu1 %v2243_v21  ;;  %2005 = vmatmul.mubr.bf16.gmra.mrb[4].mxu0 %v2256_v30 }
  0x9a   : > { %1964 = vmatprep.subr.bf16.mxu1 %v2244_v22  ;;  %2010 = vmatprep.mubr.msk.bf16.mxu0 %vm805_vm1, %v2257_v31 }
  0x9d   : > { %1965 = vmatpush3.bf16.msra.mxu1 %v2244_v22 }
  0xa0   : > { %1967 = vmatmul.mubr.bf16.vlgmr.msra.gmra.mrb[4].mxu1 %v2246_v23 }
  0xa1   : > { %1970 = vmatprep.mubr.bf16.mxu1 %v2247_v25 }
  0xa8   : > { %1971 = vmatmul.mubr.bf16.gmra.mrb[8].mxu1 %v2248_v27 }
  0xa9   : > { %1976 = vmatprep.mubr.msk.bf16.mxu1 %vm805_vm1, %v2251_v29 }
 0x153   : > { %v1949_v33 = vpop.f32.mrb[0].mxu1 }
 0x154   : > { %v604_v34 = vadd.f32 %v1949_v33, %v1746_v32  ;;  %v598_v35 = vpop.f32.mrb[1].mxu1 }
 0x155   : > { %v599_v36 = vadd.f32 %v1746_v32, %v598_v35 }
 0x157   : > { %v607_v37 = vpack.c.bf16 %v604_v34, %v599_v36 }
 0x159   : > { %1974 = vmatprep.subr.bf16.mxu1 %v607_v37  ;;  %2008 = vmatprep.subr.bf16.mxu0 %v607_v37 }
 0x15a   : > { %1975 = vmatpush3.bf16.msra.mxu1 %v607_v37  ;;  %2009 = vmatpush3.bf16.msra.mxu0 %v607_v37 }
 0x15d   : > { %1977 = vmatmul.mubr.msk.bf16.vlgmr.msra.gmra.mrb[4].mxu1 %vm805_vm1, %v2252_v38  ;;  %2011 = vmatmul.mubr.msk.bf16.vlgmr.msra.gmra.mrb[0].mxu0 %vm805_vm1, %v2258_v39  ;;  %v2474_v38 = vmov 0  }
 0x15e   : > { %1980 = vmatprep.mubr.msk.bf16.mxu1 %vm805_vm1, %v2253_v40  ;;  %2014 = vmatprep.mubr.msk.bf16.mxu0 %vm805_vm1, %v2259_v41 }
 0x15f   : > { %2236 = vset.pattern.permute.xlu1 %v2474_v38  ;;  %2235 = vset.pattern.permute.xlu0 %v2474_v38  ;;  %v1853_v38 = vld [vmem:[%s2987_s5 + $0x18] sm:$0xff]  }
 0x165   : > { %1981 = vmatmul.mubr.msk.bf16.gmra.mrb[8].mxu1 %vm805_vm1, %v2255_v42  ;;  %2015 = vmatmul.mubr.msk.bf16.gmra.mrb[4].mxu0 %vm805_vm1, %v2260_v43 }
 0x230   : > { %v1978_v45 = vpop.f32.mrb[4].mxu1  ;;  %v2012_v46 = vpop.f32.mrb[0].mxu0 }
 0x231   : > { %v2127_v47 = vadd.f32 %v1978_v45, %v2819_v44  ;;  %v852_v48 = vpop.f32.mrb[5].mxu1  ;;  %v1111_v49 = vpop.f32.mrb[1].mxu0  ;;  %v2135_v14 = vadd.f32 %v2012_v46, %v2819_v44 }
 0x232   : > { %v2128_v50 = vadd.f32 %v2819_v44, %v852_v48  ;;  %v1979_v51 = vpop.f32.mrb[6].mxu1  ;;  %v2013_v52 = vpop.f32.mrb[2].mxu0  ;;  %v2136_v9 = vadd.f32 %v2819_v44, %v1111_v49 }
 0x233   : > { %2269 = vtanh.f32 %v2127_v47  ;;  %v2129_v53 = vadd.f32 %v1979_v51, %v2819_v44  ;;  %v855_v54 = vpop.f32.mrb[7].mxu1  ;;  %v1114_v55 = vpop.f32.mrb[3].mxu0  ;;  %v2137_v17 = vadd.f32 %v2013_v52, %v2819_v44 }
 0x234   : > { %2271 = vtanh.f32 %v2128_v50  ;;  %v2130_v56 = vadd.f32 %v2819_v44, %v855_v54  ;;  %v2138_v13 = vadd.f32 %v2819_v44, %v1114_v55 }
 0x235   : > { %2273 = vtanh.f32 %v2129_v53 }
 0x236   : > { %2275 = vtanh.f32 %v2130_v56 }
 0x238   : > { %v1982_v57 = vpop.f32.mrb[8].mxu1  ;;  %v2016_v58 = vpop.f32.mrb[4].mxu0 }
 0x239   : > { %v2131_v59 = vadd.f32 %v1982_v57, %v2819_v44  ;;  %v868_v60 = vpop.f32.mrb[9].mxu1  ;;  %v1127_v61 = vpop.f32.mrb[5].mxu0  ;;  %v2139_v26 = vadd.f32 %v2016_v58, %v2819_v44 }
 0x23a   : > { %v2132_v62 = vadd.f32 %v2819_v44, %v868_v60  ;;  %v1983_v63 = vpop.f32.mrb[10].mxu1  ;;  %v2017_v0 = vpop.f32.mrb[6].mxu0  ;;  %v2140_v19 = vadd.f32 %v2819_v44, %v1127_v61 }
 0x23b   : > { %v871_v1 = vpop.f32.mrb[11].mxu1  ;;  %v1130_v3 = vpop.f32.mrb[7].mxu0  ;;  %v2133_v4 = vadd.f32 %v1983_v63, %v2819_v44  ;;  %v2141_v29 = vadd.f32 %v2017_v0, %v2819_v44 }
 0x23c   : > { %2277 = vtanh.f32 %v2132_v62  ;;  %v2134_v5 = vadd.f32 %v2819_v44, %v871_v1  ;;  %v2142_v23 = vadd.f32 %v2819_v44, %v1130_v3 }
 0x23d   : > { %v2270_v6 = vpop.eup %2269  ;;  %2279 = vtanh.f32 %v2131_v59 }
 0x23e   : > { %v2272_v7 = vpop.eup %2271  ;;  %2281 = vtanh.f32 %v2134_v5  ;;  %v907_v8 = vmul.f32 %v2270_v6, %v2830_v2 }
 0x23f   : > { %v2274_v10 = vpop.eup %2273  ;;  %v905_v11 = vmul.f32 %v2272_v7, %v2830_v2  ;;  %2283 = vtanh.f32 %v2133_v4 }
 0x240   : > { %v2276_v12 = vpop.eup %2275  ;;  %917 = vadd.xlane.f32.xlu1 %v907_v8  ;;  %2285 = vtanh.f32 %v2136_v9  ;;  %v908_v15 = vmul.f32 %v2274_v10, %v2830_v2 }
 0x241   : > { %913 = vadd.xlane.f32.xlu0 %v905_v11  ;;  %v906_v16 = vmul.f32 %v2276_v12, %v2830_v2  ;;  %2287 = vtanh.f32 %v2138_v13 }
 0x242   : > { %2289 = vtanh.f32 %v2135_v14 }
 0x243   : > { %2291 = vtanh.f32 %v2137_v17 }
 0x244   : > { %919 = vadd.xlane.f32.xlu1 %v908_v15  ;;  %2293 = vtanh.f32 %v2140_v19  ;;  %v2874_v15 = vld [vmem:[#allocation6] sm:$0xff]   ;;  %v1851_v19 = vld [vmem:[%s2987_s5 + $0x8] sm:$0xff]  }
 0x245   : > { %915 = vadd.xlane.f32.xlu0 %v906_v16  ;;  %2295 = vtanh.f32 %v2142_v23  ;;  %v1817_v16 = vunpack.c.l.bf16 %v2874_v15 }
 0x246   : > { %v2278_v18 = vpop.eup %2277  ;;  %2297 = vtanh.f32 %v2139_v26 }
 0x247   : > { %v2280_v20 = vpop.eup %2279  ;;  %v909_v21 = vmul.f32 %v2278_v18, %v2830_v2  ;;  %2299 = vtanh.f32 %v2141_v29  ;;  %2050 = vmatprep.mubr.f32.mxu1 %v1817_v16  ;;  %v1820_v18 = vld [vmem:[%s2987_s5] sm:$0xff]  }
 0x248   : > { %v2282_v22 = vpop.eup %2281  ;;  %v911_v27 = vmul.f32 %v2280_v20, %v2830_v2  ;;  %v1822_v23 = vunpack.c.h.bf16 %v1820_v18 }
 0x249   : > { %921 = vadd.xlane.f32.xlu0 %v909_v21  ;;  %v910_v24 = vmul.f32 %v2282_v22, %v2830_v2  ;;  %v2284_v25 = vpop.eup %2283  ;;  %v1821_v21 = vunpack.c.l.bf16 %v1820_v18  ;;  %v1826_v22 = vunpack.c.h.bf16 %v1851_v19 }
 0x24a   : > { %v2286_v28 = vpop.eup %2285  ;;  %v912_v30 = vmul.f32 %v2284_v25, %v2830_v2  ;;  %v1825_v25 = vunpack.c.l.bf16 %v1851_v19  ;;  %v1818_v19 = vunpack.c.h.bf16 %v2874_v15 }
 0x24b   : > { %923 = vadd.xlane.f32.xlu1 %v910_v24  ;;  %v2288_v31 = vpop.eup %2287  ;;  %v1158_v32 = vmul.f32 %v2286_v28, %v2830_v2 }
 0x24c   : > { %v2290_v33 = vpop.eup %2289  ;;  %v1159_v34 = vmul.f32 %v2288_v31, %v2830_v2 }
 0x24d   : > { %925 = vadd.xlane.f32.xlu0 %v911_v27  ;;  %v2292_v35 = vpop.eup %2291  ;;  %v1160_v36 = vmul.f32 %v2290_v33, %v2830_v2 }
 0x24e   : > { %v2294_v37 = vpop.eup %2293  ;;  %v1161_v39 = vmul.f32 %v2292_v35, %v2830_v2 }
 0x24f   : > { %927 = vadd.xlane.f32.xlu1 %v912_v30  ;;  %v2296_v40 = vpop.eup %2295  ;;  %v1162_v41 = vmul.f32 %v2294_v37, %v2830_v2 }
 0x250   : > { %v2298_v42 = vpop.eup %2297  ;;  %v1163_v43 = vmul.f32 %v2296_v40, %v2830_v2 }
 0x251   : > { %1166 = vadd.xlane.f32.xlu0 %v1158_v32  ;;  %v2300_v44 = vpop.eup %2299  ;;  %v1164_v45 = vmul.f32 %v2298_v42, %v2830_v2 }
 0x252   : > { %v1165_v46 = vmul.f32 %v2300_v44, %v2830_v2  ;;  %v1834_v44 = vunpack.c.h.bf16 %v1853_v38 }
 0x253   : > { %1168 = vadd.xlane.f32.xlu1 %v1159_v34  ;;  %v1852_v34 = vld [vmem:[%s2987_s5 + $0x10] sm:$0xff]  }
 0x254   : > { %v1830_v37 = vunpack.c.h.bf16 %v1852_v34 }
 0x255   : > { %1170 = vadd.xlane.f32.xlu0 %v1160_v36  ;;  %v1829_v36 = vunpack.c.l.bf16 %v1852_v34 }
 0x257   : > { %1172 = vadd.xlane.f32.xlu1 %v1161_v39 }
 0x259   : > { %1174 = vadd.xlane.f32.xlu0 %v1162_v41  ;;  %v1833_v41 = vunpack.c.l.bf16 %v1853_v38  ;;  %v1440_v38 = vld [vmem:[%s3019_s13] sm:$0xf] }
 0x25b   : > { %1176 = vadd.xlane.f32.xlu1 %v1163_v43 }
 0x25d   : > { %1178 = vadd.xlane.f32.xlu0 %v1164_v45  ;;  %v1854_v45 = vld [vmem:[%s2987_s5 + $0x20] sm:$0xff]  }
 0x25f   : > { %1180 = vadd.xlane.f32.xlu1 %v1165_v46 }
 0x2cd   : > { %v918_v47 = vpop.xlane.xlu1 %917 }
 0x2ce   : > { %932 = vst.msk [vmem:[#allocation2 + $0x10] sm:$0xff] %vm929_vm2, %v918_v47  ;;  %v914_v48 = vpop.xlane.xlu0 %913 }
 0x2cf   : > { %930 = vst.msk [vmem:[#allocation2] sm:$0xff] %vm929_vm2, %v914_v48 }
 0x2d1   : > { %v920_v49 = vpop.xlane.xlu1 %919 }
 0x2d2   : > { %933 = vst.msk [vmem:[#allocation2 + $0x18] sm:$0xff] %vm929_vm2, %v920_v49  ;;  %v916_v50 = vpop.xlane.xlu0 %915  ;;  %v1838_v49 = vunpack.c.h.bf16 %v1854_v45 }
 0x2d3   : > { %931 = vst.msk [vmem:[#allocation2 + $0x8] sm:$0xff] %vm929_vm2, %v916_v50 }
 0x2d5   : > { %v1229_v51 = vld [vmem:[#allocation2 + $0x10] sm:$0xff] }
 0x2d6   : > { %v922_v52 = vpop.xlane.xlu0 %921  ;;  %1255 = vperm.xlu1 %2236, %v1229_v51   ;;  %v1227_v53 = vld [vmem:[#allocation2] sm:$0xff]  ;;  %v1837_v51 = vunpack.c.l.bf16 %v1854_v45 }
 0x2d7   : > { %934 = vst.msk [vmem:[#allocation2 + $0x20] sm:$0xff] %vm929_vm2, %v922_v52  ;;  %1245 = vperm.xlu0 %2235, %v1227_v53   ;;  %v1855_v52 = vld [vmem:[%s2987_s5 + $0x28] sm:$0xff]  }
 0x2d8   : > { %v924_v54 = vpop.xlane.xlu1 %923 }
 0x2d9   : > { %935 = vst.msk [vmem:[#allocation2 + $0x28] sm:$0xff] %vm929_vm2, %v924_v54  ;;  %v1230_v55 = vld [vmem:[#allocation2 + $0x18] sm:$0xff] }
 0x2da   : > { %v926_v56 = vpop.xlane.xlu0 %925  ;;  %1260 = vperm.xlu1 %2236, %v1230_v55   ;;  %v1228_v58 = vld [vmem:[#allocation2 + $0x8] sm:$0xff] }
 0x2db   : > { %936 = vst.msk [vmem:[#allocation2 + $0x30] sm:$0xff] %vm929_vm2, %v926_v56 }
 0x2dc   : > { %v928_v57 = vpop.xlane.xlu1 %927 }
 0x2dd   : > { %937 = vst.msk [vmem:[#allocation2 + $0x38] sm:$0xff] %vm929_vm2, %v928_v57  ;;  %v1842_v57 = vunpack.c.h.bf16 %v1855_v52 }
 0x2de   : > { %1250 = vperm.xlu1 %2236, %v1228_v58   ;;  %v1167_v59 = vpop.xlane.xlu0 %1166  ;;  %v1231_v0 = vld [vmem:[#allocation2 + $0x20] sm:$0xff] }
 0x2df   : > { %1183 = vst.msk [vmem:[#allocation2 + $0x40] sm:$0xff] %vm929_vm2, %v1167_v59  ;;  %v1841_v59 = vunpack.c.l.bf16 %v1855_v52  ;;  %v2265_v52 = vld [vmem:[%s2754_s27 + $0x20] sm:$0xff]  }
 0x2e0   : > { %v1169_v60 = vpop.xlane.xlu1 %1168  ;;  %v1232_v4 = vld [vmem:[#allocation2 + $0x28] sm:$0xff] }
 0x2e1   : > { %1184 = vst.msk [vmem:[#allocation2 + $0x48] sm:$0xff] %vm929_vm2, %v1169_v60  ;;  %v1856_v60 = vld [vmem:[%s2987_s5 + $0x30] sm:$0xff]  }
 0x2e2   : > { %v1233_v61 = vld [vmem:[#allocation2 + $0x30] sm:$0xff]  ;;  %v1171_v62 = vpop.xlane.xlu0 %1170 }
 0x2e3   : > { %1275 = vperm.xlu1 %2236, %v1233_v61   ;;  %1185 = vst.msk [vmem:[#allocation2 + $0x50] sm:$0xff] %vm929_vm2, %v1171_v62 }
 0x2e4   : > { %v1173_v63 = vpop.xlane.xlu1 %1172  ;;  %v1234_v8 = vld [vmem:[#allocation2 + $0x38] sm:$0xff] }
 0x2e5   : > { %1186 = vst.msk [vmem:[#allocation2 + $0x58] sm:$0xff] %vm929_vm2, %v1173_v63 }
 0x2e6   : > { %v1175_v1 = vpop.xlane.xlu0 %1174  ;;  %v1235_v10 = vld [vmem:[#allocation2 + $0x40] sm:$0xff] }
 0x2e7   : > { %1265 = vperm.xlu1 %2236, %v1231_v0   ;;  %1187 = vst.msk [vmem:[#allocation2 + $0x60] sm:$0xff] %vm929_vm2, %v1175_v1  ;;  %v1846_v1 = vunpack.c.h.bf16 %v1856_v60 }
 0x2e8   : > { %v1177_v2 = vpop.xlane.xlu1 %1176  ;;  %v1236_v3 = vld [vmem:[#allocation2 + $0x48] sm:$0xff] }
 0x2e9   : > { %1188 = vst.msk [vmem:[#allocation2 + $0x68] sm:$0xff] %vm929_vm2, %v1177_v2  ;;  %1290 = vperm.xlu0 %2235, %v1236_v3   ;;  %v1845_v3 = vunpack.c.l.bf16 %v1856_v60 }
 0x2ea   : > { %v1179_v5 = vpop.xlane.xlu0 %1178  ;;  %v1237_v12 = vld [vmem:[#allocation2 + $0x50] sm:$0xff] }
 0x2eb   : > { %1270 = vperm.xlu1 %2236, %v1232_v4   ;;  %1189 = vst.msk [vmem:[#allocation2 + $0x70] sm:$0xff] %vm929_vm2, %v1179_v5  ;;  %v1857_v4 = vld [vmem:[%s2987_s5 + $0x38] sm:$0xff]  }
 0x2ec   : > { %v1181_v6 = vpop.xlane.xlu1 %1180  ;;  %v1238_v7 = vld [vmem:[#allocation2 + $0x58] sm:$0xff] }
 0x2ed   : > { %1190 = vst.msk [vmem:[#allocation2 + $0x78] sm:$0xff] %vm929_vm2, %v1181_v6  ;;  %1300 = vperm.xlu0 %2235, %v1238_v7  }
 0x2ee   : > { %v1239_v13 = vld [vmem:[#allocation2 + $0x60] sm:$0xff] }
 0x2ef   : > { %1280 = vperm.xlu1 %2236, %v1234_v8   ;;  %v1850_v8 = vunpack.c.h.bf16 %v1857_v4 }
 0x2f0   : > { %v1240_v9 = vld [vmem:[#allocation2 + $0x68] sm:$0xff] }
 0x2f1   : > { %1310 = vperm.xlu0 %2235, %v1240_v9  }
 0x2f2   : > { %v1241_v14 = vld [vmem:[#allocation2 + $0x70] sm:$0xff] }
 0x2f3   : > { %1285 = vperm.xlu1 %2236, %v1235_v10   ;;  %v1849_v10 = vunpack.c.l.bf16 %v1857_v4 }
 0x2f4   : > { %v1242_v11 = vld [vmem:[#allocation2 + $0x78] sm:$0xff] }
 0x2f5   : > { %1320 = vperm.xlu0 %2235, %v1242_v11  }
 0x2f7   : > { %1295 = vperm.xlu1 %2236, %v1237_v12  }
 0x2fb   : > { %1305 = vperm.xlu1 %2236, %v1239_v13  }
 0x2ff   : > { %1315 = vperm.xlu1 %2236, %v1241_v14  }
 0x355   : > { %v1256_v17 = vpop.permute.xlu1 %1255 }
 0x356   : > { %v1246_v24 = vpop.permute.xlu0 %1245  ;;  %v1325_v30 = vmul.f32 %v1825_v25, %v1256_v17 }
 0x357   : > { %v1323_v27 = vmul.f32 %v1821_v21, %v1246_v24  ;;  %v1339_v21 = vld [vmem:[%s504_s21] sm:$0xff] }
 0x359   : > { %v1261_v20 = vpop.permute.xlu1 %1260 }
 0x35a   : > { %v1326_v28 = vmul.f32 %v1826_v22, %v1261_v20  ;;  %v1340_v20 = vld [vmem:[%s504_s21 + $0x8] sm:$0xff]  ;;  %s1600_s21 = scalar_lea.sflag [#allocation5], %s2723_s28 }
 0x35c   : > { %v2099_v32 = vpack.c.bf16 %v1326_v28, %v1325_v30 }
 0x35d   : > { %v1251_v26 = vpop.permute.xlu1 %1250 }
 0x35e   : > { %v1324_v29 = vmul.f32 %v1822_v23, %v1251_v26 }
 0x360   : > { %v2095_v31 = vpack.c.bf16 %v1324_v29, %v1323_v27 }
 0x362   : > { %2096 = vmatprep.subr.bf16.mxu1 %v2095_v31  ;;  %v1276_v33 = vpop.permute.xlu1 %1275 }
 0x363   : > { %2098 = vmatpush3.bf16.msra.mxu1 %v2095_v31  ;;  %v1329_v48 = vmul.f32 %v1833_v41, %v1276_v33 }
 0x364   : > { %2100 = vmatprep.subr.bf16.mxu1 %v2099_v32 }
 0x366   : > { %v1266_v35 = vpop.permute.xlu1 %1265 }
 0x367   : > { %2102 = vmatpush3.bf16.msra.mxu1 %v2099_v32  ;;  %v1327_v42 = vmul.f32 %v1829_v36, %v1266_v35 }
 0x368   : > { %v1291_v39 = vpop.permute.xlu0 %1290 }
 0x369   : > { %v1332_v56 = vmul.f32 %v1838_v49, %v1291_v39  ;;  %v2475_v39 = vmov 0.0   ;;  %v2262_v49 = vld [vmem:[%s2754_s27 + $0x8] sm:$0xff]  }
 0x36a   : > { %v1271_v40 = vpop.permute.xlu1 %1270  ;;  %2053 = vmatprep.subr.bf16.mxu0 %v2475_v39  ;;  %2055 = vmatprep.mubr.msk.bf16.mxu0 %vm2476_vm5, %v2475_v39 }
 0x36b   : > { %v1328_v43 = vmul.f32 %v1830_v37, %v1271_v40  ;;  %v1446_v40 = vsel %vm1444_vm4, %v1440_v38, 0 }
 0x36c   : > { %v1301_v53 = vpop.permute.xlu0 %1300  ;;  %2054 = vmatpush3.bf16.msra.mxu0 %v1446_v40 }
 0x36d   : > { %v2103_v46 = vpack.c.bf16 %v1328_v43, %v1327_v42  ;;  %v1334_v0 = vmul.f32 %v1842_v57, %v1301_v53  ;;  %2059 = vmatprep.subr.bf16.mxu0 %v2475_v39  ;;  %v2266_v53 = vld [vmem:[%s2754_s27 + $0x28] sm:$0xff]  }
 0x36e   : > { %v1281_v47 = vpop.permute.xlu1 %1280 }
 0x36f   : > { %v1330_v50 = vmul.f32 %v1834_v44, %v1281_v47  ;;  %2104 = vmatprep.subr.bf16.mxu1 %v2103_v46  ;;  %v2261_v47 = vld [vmem:[%s2754_s27] sm:$0xff]  }
 0x370   : > { %2106 = vmatpush3.bf16.msra.mxu1 %v2103_v46  ;;  %v1311_v62 = vpop.permute.xlu0 %1310 }
 0x371   : > { %v2107_v54 = vpack.c.bf16 %v1330_v50, %v1329_v48  ;;  %v1336_v7 = vmul.f32 %v1846_v1, %v1311_v62  ;;  %v2263_v50 = vld [vmem:[%s2754_s27 + $0x10] sm:$0xff]  }
 0x372   : > { %v1286_v55 = vpop.permute.xlu1 %1285 }
 0x373   : > { %v1331_v58 = vmul.f32 %v1837_v51, %v1286_v55  ;;  %2108 = vmatprep.subr.bf16.mxu1 %v2107_v54  ;;  %v2264_v51 = vld [vmem:[%s2754_s27 + $0x18] sm:$0xff]  }
 0x374   : > { %2110 = vmatpush3.bf16.msra.mxu1 %v2107_v54  ;;  %v1321_v11 = vpop.permute.xlu0 %1320  ;;  %v2267_v54 = vld [vmem:[%s2754_s27 + $0x30] sm:$0xff]   ;;  %v2268_v55 = vld [vmem:[%s2754_s27 + $0x38] sm:$0xff]  }
 0x375   : > { %v2111_v61 = vpack.c.bf16 %v1332_v56, %v1331_v58  ;;  %v1338_v14 = vmul.f32 %v1850_v8, %v1321_v11 }
 0x376   : > { %v1296_v63 = vpop.permute.xlu1 %1295 }
 0x377   : > { %v1333_v2 = vmul.f32 %v1841_v59, %v1296_v63  ;;  %2112 = vmatprep.subr.bf16.mxu1 %v2111_v61 }
 0x378   : > { %2114 = vmatpush3.bf16.msra.mxu1 %v2111_v61 }
 0x379   : > { %v2115_v5 = vpack.c.bf16 %v1334_v0, %v1333_v2 }
 0x37a   : > { %v1306_v6 = vpop.permute.xlu1 %1305 }
 0x37b   : > { %v1335_v9 = vmul.f32 %v1845_v3, %v1306_v6  ;;  %2116 = vmatprep.subr.bf16.mxu1 %v2115_v5 }
 0x37c   : > { %2118 = vmatpush3.bf16.msra.mxu1 %v2115_v5 }
 0x37d   : > { %v2119_v12 = vpack.c.bf16 %v1336_v7, %v1335_v9 }
 0x37e   : > { %v1316_v13 = vpop.permute.xlu1 %1315 }
 0x37f   : > { %v1337_v17 = vmul.f32 %v1849_v10, %v1316_v13  ;;  %2120 = vmatprep.subr.bf16.mxu1 %v2119_v12 }
 0x380   : > { %2122 = vmatpush3.bf16.msra.mxu1 %v2119_v12 }
 0x381   : > { %v2123_v18 = vpack.c.bf16 %v1338_v14, %v1337_v17 }
 0x383   : > { %2124 = vmatprep.subr.bf16.mxu1 %v2123_v18 }
 0x384   : > { %2126 = vmatpush3.bf16.msra.mxu1 %v2123_v18 }
 0x387   : > { %2051 = vmatmul.mubr.f32.vlgmr.msra.gmra.mrb[2].mxu1 %v1818_v19 }
 0x45a   : > { %v2052_v22 = vpop.f32.mrb[2].mxu1 }
 0x45b   : > { %v1413_v23 = vadd.f32 %v2052_v22, %v1340_v20  ;;  %v1407_v24 = vpop.f32.mrb[3].mxu1 }
 0x45c   : > { %v1408_v25 = vadd.f32 %v1407_v24, %v1339_v21 }
 0x45d   : > { %v1420_v26 = vsel %vm1416_vm3, %v1413_v23, -inf }
 0x45e   : > { %1421 = vmax.xlane.f32.xlu0 %v1420_v26  ;;  %v1417_v27 = vsel %vm1416_vm3, %v1408_v25, -inf }
 0x45f   : > { %1418 = vmax.xlane.f32.xlu1 %v1417_v27 }
 0x4eb   : > { %v1422_v28 = vpop.xlane.xlu0 %1421 }
 0x4ec   : > { %v1424_v29 = vsub.f32 %v1413_v23, %v1422_v28  ;;  %v1419_v30 = vpop.xlane.xlu1 %1418 }
 0x4ed   : > { %v1423_v31 = vsub.f32 %v1408_v25, %v1419_v30 }
 0x4ee   : > { %v1427_v32 = vmul.f32 1.442695, %v1424_v29 }
 0x4ef   : > { %v1425_v33 = vmul.f32 1.442695, %v1423_v31 }
 0x4f0   : > { %2301 = vpow2.f32 %v1427_v32 }
 0x4f1   : > { %2303 = vpow2.f32 %v1425_v33 }
 0x4fa   : > { %v2302_v34 = vpop.eup %2301 }
 0x4fb   : > { %v2304_v35 = vpop.eup %2303  ;;  %v1432_v36 = vsel %vm1416_vm3, %v2302_v34, 0.0 }
 0x4fc   : > { %1433 = vadd.xlane.f32.xlu1 %v1432_v36  ;;  %v1429_v37 = vsel %vm1416_vm3, %v2304_v35, 0.0 }
 0x4fd   : > { %1430 = vadd.xlane.f32.xlu0 %v1429_v37 }
 0x589   : > { %v1434_v41 = vpop.xlane.xlu1 %1433 }
 0x58a   : > { %2305 = vrcp.f32 %v1434_v41  ;;  %v1431_v42 = vpop.xlane.xlu0 %1430 }
 0x58b   : > { %2307 = vrcp.f32 %v1431_v42 }
 0x594   : > { %v2306_v43 = vpop.eup %2305 }
 0x595   : > { %v2308_v44 = vpop.eup %2307  ;;  %v1438_v45 = vmul.f32 %v2306_v43, %v2302_v34 }
 0x596   : > { %v1437_v46 = vmul.f32 %v2308_v44, %v2304_v35 }
 0x598   : > { %v1439_v48 = vpack.c.bf16 %v1438_v45, %v1437_v46 }
 0x59a   : > { %2056 = vmatmul.mubr.msk.bf16.vlgmr.msra.gmra.mrb[8].mxu0 %vm1416_vm3, %v1439_v48 }
 0x59b   : > { %2060 = vmatpush3.bf16.msra.mxu0 %v2261_v47  ;;  %2075 = vmatprep.mubr.msk.bf16.mxu0 %vm2476_vm5, %v2475_v39 }
 0x59c   : > { %2061 = vmatprep.subr.bf16.mxu0 %v2475_v39 }
 0x59f   : > { %2062 = vmatpush3.bf16.msra.mxu0 %v2262_v49 }
 0x5a0   : > { %2063 = vmatprep.subr.bf16.mxu0 %v2475_v39 }
 0x5a3   : > { %2064 = vmatpush3.bf16.msra.mxu0 %v2263_v50 }
 0x5a4   : > { %2065 = vmatprep.subr.bf16.mxu0 %v2475_v39 }
 0x5a7   : > { %2066 = vmatpush3.bf16.msra.mxu0 %v2264_v51 }
 0x5a8   : > { %2067 = vmatprep.subr.bf16.mxu0 %v2475_v39 }
 0x5ab   : > { %2068 = vmatpush3.bf16.msra.mxu0 %v2265_v52 }
 0x5ac   : > { %2069 = vmatprep.subr.bf16.mxu0 %v2475_v39 }
 0x5af   : > { %2070 = vmatpush3.bf16.msra.mxu0 %v2266_v53 }
 0x5b0   : > { %2071 = vmatprep.subr.bf16.mxu0 %v2475_v39 }
 0x5b3   : > { %2072 = vmatpush3.bf16.msra.mxu0 %v2267_v54 }
 0x5b4   : > { %2073 = vmatprep.subr.bf16.mxu0 %v2475_v39 }
 0x5b7   : > { %2074 = vmatpush3.bf16.msra.mxu0 %v2268_v55 }
 0x66d   : > { %v1482_v56 = vpop.f32.mrb[8].mxu0 }
 0x66e   : > { %v2057_v57 = vpop.f32.mrb[9].mxu0  ;;  %v1489_v59 = vmul.f32 %v1817_v16, %v1482_v56 }
 0x66f   : > { %v1485_v58 = vpop.f32.mrb[10].mxu0 }
 0x670   : > { %v1490_v60 = vmul.f32 %v1818_v19, %v1485_v58  ;;  %v2058_v61 = vpop.f32.mrb[11].mxu0 }
 0x672   : > { %v1491_v62 = vpack.c.bf16 %v1490_v60, %v1489_v59 }
 0x674   : > { %2076 = vmatmul.mubr.bf16.vlgmr.msra.gmra.mrb[12].mxu0 %v1491_v62 }
 0x747   : > { %v1590_v63 = vpop.f32.mrb[12].mxu0 }
 0x748   : > { %1597 = vst [vmem:[%s492_s19] sm:$0xff] %v1590_v63  ;;  %v2077_v15 = vpop.f32.mrb[13].mxu0 }
 0x749   : > { %v1593_v16 = vpop.f32.mrb[14].mxu0 }
 0x74a   : > { %1598 = vst [vmem:[%s492_s19 + $0x8] sm:$0xff] %v1593_v16  ;;  %v2078_v0 = vpop.f32.mrb[15].mxu0 }
 0x74b   : > { %2408 = shalt.err (!%p2405_p6)
}
 0x74c   : > { %s2409_s13 = scalar_lea.hbm %s2938_s29, 256  ;;  %s2413_s27 = scalar_lea.hbm %s3020_s6, 512 }
 0x74d   : > { %p2410_p10 = scmp.ne.s32.totalorder %s2938_s29, %s2409_s13  ;;  %p2414_p8 = scmp.lt.u32.totalorder %s2938_s29, %s3020_s6 }
 0x74e   : > { %p2415_p11 = scmp.lt.u32.totalorder %s2413_s27, %s2409_s13  ;;  %p2417_p1 = scmp.lt.u32.totalorder %s2409_s13, %s2938_s29 }
 0x74f   : > { %p2411_p4 = pnand %p2410_p10, %p3021_p3 }
 0x750   : > { %p2416_p0 = por %p2415_p11, %p2414_p8 }
 0x751   : > { %p2412_p7 = pneg %p2411_p4 }
 0x752   : > { %p2418_p5 = por %p2417_p1, %p2416_p0 }
 0x754   : > { %p2419_p9 = pnand %p2418_p5, %p2412_p7 }
 0x756   : > { %2422 = shalt.err (!%p2419_p9)
}
 0x757   : > { %s2478_s26 = smov 128   ;;  %s2479_s18 = smov 8  }
 0x758   : > { %2169 = dma.vmem_to_hbm [thread:$0]  (%p3021_p3), %s2933_s12, 256, %s2938_s29, %s1600_s21, %s2478_s26, %s2478_s26, %s2479_s18  }
 0x759 PF: > { %s3022_s16 = sld [smem:[#allocation13_spill]]  ;;  %s3023_s19 = sld [smem:[#allocation14_spill]] }
 0x75a   : > { %p3025_p2 = scmp.ge.s32.totalorder %s2465_s24, 2 }
 0x75f   : > { %s1628_s15 = sand.u32 1, %s3022_s16   ;;  %p3024_p12 = scmp.ne.s32.totalorder %s3023_s19, 0 }
 0x760   : > { %s1629_s13 = scalar_lea.sflag [#allocation5], %s1628_s15 }
 0x761   : > { %p2183_p13 = pnand %p3025_p2, %p3024_p12 }
 0x763   : > { %2448 = dma.done.wait (!%p2183_p13), %s1629_s13, 256  }
 0x764   : > { %2450 = vsyncadd (!%p2183_p13), %s1629_s13, 4294967040  ;;  %p26_p6 = scmp.ge.s32.totalorder %s2658_s17, 4   ;;  %s3026_s21 = smov %s2457_s22 }
 0x765   : > { %s3027_s22 = smov %s2461_s23  ;;  %s3028_s23 = smov %s2667_s20 }
 0x766   : > { %s3029_s24 = smov %s2658_s17  ;;  %28 = sbr.rel (!%p26_p6) target bundleno = 9 (0x9), region = 130 }
 0x76d   :  { %1634 = vsyncpa [#allocation4], 1 }
 0x76e   :  { %1636 = vsyncpa [#allocation4 + $0x1], 1 }
 0x76f   :  { %1637 = vsyncpa [#allocation7], 1 }
 0x770   :  { %1638 = vsyncpa [#allocation5], 1 }
 0x771   :  { %1640 = vsyncpa [#allocation5 + $0x1], 1 }

</bundles_post_ra>
